<compile_context>
chip_gen: v5e
topology: v5e:2x2
jax: 0.10.0
libtpu: 0.0.40
codegen_flags: <defaults>
</compile_context>

<pallas_src>
import jax
import jax.numpy as jnp
from jax.experimental import pallas as pl
from jax.experimental.pallas import tpu as pltpu

# Keep f32 matmuls at full precision on TPU so the kernels and the pure-JAX
# reference agree tightly.
jax.config.update("jax_default_matmul_precision", "highest")


def _sigmoid(z):
    return 1.0 / (1.0 + jnp.exp(-z))


def _pick_batch_tile(batch, cap=64):
    """Largest multiple-of-8 divisor of `batch` up to `cap` (sublane friendly)."""
    if batch % 8 != 0:
        return batch
    bt = 8
    for c in range(8, min(batch, cap) + 1, 8):
        if batch % c == 0:
            bt = c
    return bt


def reverse_padded(x, lengths):
    """reverse_padded_sequence (batch_first): reverse the first lengths[b] steps of
    each sequence along axis 1; padding positions keep their place."""
    T = x.shape[1]
    t_idx = jnp.arange(T)[None, :]
    ln = lengths[:, None]
    rev = jnp.where(t_idx < ln, ln - 1 - t_idx, t_idx).astype(jnp.int32)   # (B, T)
    idx = rev.reshape(rev.shape + (1,) * (x.ndim - 2))
    return jnp.take_along_axis(x, idx, axis=1)


# ----------------------------------------------------------------------------------
# Kernel 1: multi-layer LSTM recurrence, both directions, packed-sequence semantics.
# ----------------------------------------------------------------------------------
def _make_lstm_kernel(num_layers, hidden):
    H, L = hidden, num_layers

    def kernel(x_ref, mask_ref, wih0_ref, *rest):
        if L > 1:
            wihr_ref, whh_ref, b_ref, out_ref, h_scr, c_scr = rest
        else:
            whh_ref, b_ref, out_ref, h_scr, c_scr = rest

        t = pl.program_id(2)

        @pl.when(t == 0)
        def _init():
            h_scr[...] = jnp.zeros_like(h_scr)
            c_scr[...] = jnp.zeros_like(c_scr)

        valid = mask_ref[...]                         # (bt, 1), 1.0 where t < length
        x_l = x_ref[...]                              # (bt, D_in)

        for l in range(L):
            w_ih = wih0_ref[...] if l == 0 else wihr_ref[l - 1]
            h_prev = h_scr[l]
            c_prev = c_scr[l]
            gates = (jnp.dot(x_l, w_ih, preferred_element_type=jnp.float32)
                     + jnp.dot(h_prev, whh_ref[l], preferred_element_type=jnp.float32)
                     + b_ref[l])                      # (bt, 4H), gate order i|f|g|o
            i_g = _sigmoid(gates[:, 0 * H:1 * H])
            f_g = _sigmoid(gates[:, 1 * H:2 * H])
            g_g = jnp.tanh(gates[:, 2 * H:3 * H])
            o_g = _sigmoid(gates[:, 3 * H:4 * H])
            c_new = f_g * c_prev + i_g * g_g
            h_new = o_g * jnp.tanh(c_new)
            # pack_padded_sequence semantics: freeze state & zero outputs past length
            h_scr[l] = valid * h_new + (1.0 - valid) * h_prev
            c_scr[l] = valid * c_new + (1.0 - valid) * c_prev
            x_l = valid * h_new                       # input to next layer / output

        out_ref[...] = x_l.astype(out_ref.dtype)

    return kernel


def lstm_directions(x_stacked, mask_tb1, wih0_s, wihr_s, whh_s, bias_s, *,
                    hidden, num_layers):
    """Run the multi-layer LSTM for every direction.
    x_stacked: (bi, T, B, D) time-major (direction 1 already length-reversed),
    mask_tb1:  (T, B, 1) validity mask.  Returns (bi, T, B, H)."""
    bi, T, B, D = x_stacked.shape
    H, L = hidden, num_layers
    bt = _pick_batch_tile(B)
    nb = B // bt

    kernel = _make_lstm_kernel(L, H)

    in_specs = [
        pl.BlockSpec((None, None, bt, D), lambda d, b, t: (d, t, b, 0)),
        pl.BlockSpec((None, bt, 1), lambda d, b, t: (t, b, 0)),
        pl.BlockSpec((None, D, 4 * H), lambda d, b, t: (d, 0, 0)),
    ]
    inputs = [x_stacked, mask_tb1, wih0_s]
    if L > 1:
        in_specs.append(
            pl.BlockSpec((None, L - 1, H, 4 * H), lambda d, b, t: (d, 0, 0, 0)))
        inputs.append(wihr_s)
    in_specs += [
        pl.BlockSpec((None, L, H, 4 * H), lambda d, b, t: (d, 0, 0, 0)),
        pl.BlockSpec((None, L, 1, 4 * H), lambda d, b, t: (d, 0, 0, 0)),
    ]
    inputs += [whh_s, bias_s]

    return pl.pallas_call(
        kernel,
        out_shape=jax.ShapeDtypeStruct((bi, T, B, H), jnp.float32),
        grid=(bi, nb, T),
        in_specs=in_specs,
        out_specs=pl.BlockSpec((None, None, bt, H), lambda d, b, t: (d, t, b, 0)),
        scratch_shapes=[pltpu.VMEM((L, bt, H), jnp.float32),
                        pltpu.VMEM((L, bt, H), jnp.float32)],
        compiler_params=pltpu.CompilerParams(
            dimension_semantics=("parallel", "parallel", "arbitrary")),
    )(*inputs)


# ----------------------------------------------------------------------------------
# Kernel 2: fused attention epilogue (scores, masked softmax over time, pooling,
#           per-sample orthogonality penalty).  Bi-directional feature concat is
#           fused by splitting Wa1 into forward/backward halves.
# ----------------------------------------------------------------------------------
def _make_attention_kernel(T, bt, H, da, r, bi_num):
    def kernel(*refs):
        if bi_num == 2:
            (of_ref, ob_ref, mask_ref, wa1f_ref, wa1b_ref, ba1_ref, wa2_ref,
             out_ref, pen_ref) = refs
        else:
            (of_ref, mask_ref, wa1f_ref, ba1_ref, wa2_ref, out_ref, pen_ref) = refs

        of = of_ref[...]                                   # (T, bt, H)
        msk = mask_ref[...]                                # (T, bt, 1)

        pre = jnp.dot(of.reshape(T * bt, H), wa1f_ref[...],
                      preferred_element_type=jnp.float32)
        if bi_num == 2:
            ob = ob_ref[...]
            pre = pre + jnp.dot(ob.reshape(T * bt, H), wa1b_ref[...],
                                preferred_element_type=jnp.float32)
        hid = jnp.tanh(pre + ba1_ref[...])                 # (T*bt, da)
        pot = jnp.dot(hid, wa2_ref[...],
                      preferred_element_type=jnp.float32).reshape(T, bt, r)

        # masked softmax over the time axis (only the first length[b] steps count)
        neg = jnp.float32(-1e30)
        pot_m = jnp.where(msk > 0.0, pot, neg)
        mx = jnp.max(pot_m, axis=0, keepdims=True)         # (1, bt, r)
        e = jnp.exp(pot_m - mx) * msk                      # exact 0 on padding
        s = jnp.sum(e, axis=0, keepdims=True)
        w = e / s                                          # (T, bt, r)

        # attention pooling -> one lane-dense (bt, r * bi * H) store
        pieces = []
        for i in range(r):
            wi = w[:, :, i:i + 1]                          # (T, bt, 1)
            pieces.append(jnp.sum(wi * of, axis=0))        # (bt, H)
            if bi_num == 2:
                pieces.append(jnp.sum(wi * ob, axis=0))
        out_ref[...] = jnp.concatenate(pieces, axis=1).astype(out_ref.dtype)

        # per-sample penalty: || sqrt(W) sqrt(W)^T - I ||_F^2
        sq = jnp.sqrt(w)
        pen = jnp.zeros((bt, 1), jnp.float32)
        for i in range(r):
            for j in range(r):
                g = jnp.sum(sq[:, :, i:i + 1] * sq[:, :, j:j + 1], axis=0)  # (bt, 1)
                d = g - (1.0 if i == j else 0.0)
                pen = pen + d * d
        pen_ref[...] = pen

    return kernel


def attention_pool(out_f, out_b, mask_tb1, wa1, ba1, wa2, *, bi_num):
    """out_f/out_b: (T, B, H) time-major LSTM outputs (out_b already re-aligned).
    Returns (out_final (B, bi*r*H), per-sample penalty (B, 1))."""
    T, B, H = out_f.shape
    da = wa1.shape[1]
    r = wa2.shape[1]
    bt = _pick_batch_tile(B)
    nb = B // bt

    kernel = _make_attention_kernel(T, bt, H, da, r, bi_num)

    inputs = [out_f]
    in_specs = [pl.BlockSpec((T, bt, H), lambda b: (0, b, 0))]
    if bi_num == 2:
        inputs.append(out_b)
        in_specs.append(pl.BlockSpec((T, bt, H), lambda b: (0, b, 0)))
    inputs += [mask_tb1, wa1[:H]]
    in_specs += [pl.BlockSpec((T, bt, 1), lambda b: (0, b, 0)),
                 pl.BlockSpec((H, da), lambda b: (0, 0))]
    if bi_num == 2:
        inputs.append(wa1[H:])
        in_specs.append(pl.BlockSpec((H, da), lambda b: (0, 0)))
    inputs += [ba1, wa2]
    in_specs += [pl.BlockSpec((1, da), lambda b: (0, 0)),
                 pl.BlockSpec((da, r), lambda b: (0, 0))]

    out_final, pen = pl.pallas_call(
        kernel,
        out_shape=(jax.ShapeDtypeStruct((B, bi_num * r * H), jnp.float32),
                   jax.ShapeDtypeStruct((B, 1), jnp.float32)),
        grid=(nb,),
        in_specs=in_specs,
        out_specs=(pl.BlockSpec((bt, bi_num * r * H), lambda b: (b, 0)),
                   pl.BlockSpec((bt, 1), lambda b: (b, 0))),
        compiler_params=pltpu.CompilerParams(dimension_semantics=("parallel",)),
    )(*inputs)
    return out_final, pen


# ----------------------------------------------------------------------------------
# Full module forward (matches LSTM.forward(x, length) in inference mode)
# ----------------------------------------------------------------------------------
def attention_lstm_forward(x, lengths, params, *, hidden, num_layers, bi_num):
    """x: (B, T, D) batch-first, lengths: (B,) int32.
    Returns (out_final (B, r*bi*H), lengths, penalty scalar)."""
    B, T, D = x.shape
    x = x.astype(jnp.float32)

    # validity mask shared by both directions (time-major for the kernels)
    mask_tb1 = (jnp.arange(T)[:, None] < lengths[None, :]
                ).astype(jnp.float32)[:, :, None]                    # (T, B, 1)

    # Direction-stacked, time-major inputs; the backward direction sees the
    # length-reversed sequence (reverse_padded_sequence).  The gather/transpose
    # glue stays in JAX; the recurrence itself is one fused Pallas kernel.
    xs = [x]
    if bi_num == 2:
        xs.append(reverse_padded(x, lengths))
    x_stacked = jnp.stack([jnp.transpose(xi, (1, 0, 2)) for xi in xs], axis=0)

    outs = lstm_directions(x_stacked, mask_tb1, params["wih0"],
                           params.get("wihr"), params["whh"], params["b"],
                           hidden=hidden, num_layers=num_layers)     # (bi, T, B, H)

    out_f = outs[0]
    out_b = None
    if bi_num == 2:
        # re-align backward outputs with forward time (reverse within each length)
        ob_bth = jnp.transpose(outs[1], (1, 0, 2))
        out_b = jnp.transpose(reverse_padded(ob_bth, lengths), (1, 0, 2))

    out_final, pen = attention_pool(out_f, out_b, mask_tb1,
                                    params["wa1"], params["ba1"], params["wa2"],
                                    bi_num=bi_num)
    return out_final, lengths, jnp.sum(pen)


# ----------------------------------------------------------------------------------
# Pure-JAX reference (same math, no Pallas) for correctness checking
# ----------------------------------------------------------------------------------
def reference_forward(x, lengths, params, *, hidden, num_layers, bi_num):
    B, T, D = x.shape
    H, L = hidden, num_layers
    x = x.astype(jnp.float32)
    mask_bt = (jnp.arange(T)[None, :] < lengths[:, None]).astype(jnp.float32)

    def run_dir(xd, d):
        inp = xd
        for l in range(L):
            w_ih = params["wih0"][d] if l == 0 else params["wihr"][d, l - 1]
            w_hh = params["whh"][d, l]
            bias = params["b"][d, l, 0]
            h = jnp.zeros((B, H), jnp.float32)
            c = jnp.zeros((B, H), jnp.float32)
            outs = []
            for t in range(T):
                g = inp[:, t, :] @ w_ih + h @ w_hh + bias
                i_g = _sigmoid(g[:, :H])
                f_g = _sigmoid(g[:, H:2 * H])
                g_g = jnp.tanh(g[:, 2 * H:3 * H])
                o_g = _sigmoid(g[:, 3 * H:])
                c_new = f_g * c + i_g * g_g
                h_new = o_g * jnp.tanh(c_new)
                m = mask_bt[:, t:t + 1]
                h = m * h_new + (1 - m) * h
                c = m * c_new + (1 - m) * c
                outs.append(m * h_new)
            inp = jnp.stack(outs, axis=1)
        return inp                                              # (B, T, H)

    parts = [run_dir(x, 0)]
    if bi_num == 2:
        parts.append(reverse_padded(run_dir(reverse_padded(x, lengths), 1), lengths))
    out = jnp.concatenate(parts, axis=2)                        # (B, T, bi*H)

    potential = jnp.tanh(out @ params["wa1"] + params["ba1"]) @ params["wa2"]
    r = params["wa2"].shape[1]
    weight = jnp.zeros((B, T, r), jnp.float32)
    for b in range(B):
        lb = int(lengths[b])
        weight = weight.at[b, :lb].set(jax.nn.softmax(potential[b, :lb], axis=0))
    weight_t = jnp.transpose(weight, (0, 2, 1))                 # (B, r, T)
    out_final = jnp.matmul(weight_t, out).reshape(B, -1)
    sw = jnp.sqrt(weight_t)
    gram = jnp.matmul(sw, jnp.transpose(sw, (0, 2, 1)))
    penalty = jnp.sum((gram - jnp.eye(r, dtype=jnp.float32)[None]) ** 2)
    return out_final, lengths, penalty


if __name__ == "__main__":
    key = jax.random.PRNGKey(0)
    ks = jax.random.split(key, 9)

    # Small but TPU-friendly shapes: batch multiple of 8 (sublanes), 4*H = 128 lanes.
    B, T, D = 8, 12, 16          # batch, max sequence length, input features
    H, L = 32, 2                 # hidden size, LSTM layers
    biFlag = True
    bi_num = 2 if biFlag else 1
    da, r = 16, 4                # attention hidden size, attention heads

    def unif(k, shape, bound):
        return jax.random.uniform(k, shape, jnp.float32, minval=-bound, maxval=bound)

    kb_lstm = 1.0 / (H ** 0.5)
    kb_a1 = 1.0 / ((bi_num * H) ** 0.5)
    kb_a2 = 1.0 / (da ** 0.5)
    params = {
        # per-direction LSTM weights, gate order i|f|g|o, stored [in, 4H]
        "wih0": unif(ks[0], (bi_num, D, 4 * H), kb_lstm),
        "wihr": unif(ks[1], (bi_num, L - 1, H, 4 * H), kb_lstm),
        "whh":  unif(ks[2], (bi_num, L, H, 4 * H), kb_lstm),
        "b":    unif(ks[3], (bi_num, L, 1, 4 * H), kb_lstm),   # b_ih + b_hh folded
        # simple_attention: Linear(bi*H -> da) -> Tanh -> Linear(da -> r, no bias)
        "wa1":  unif(ks[4], (bi_num * H, da), kb_a1),
        "ba1":  unif(ks[5], (1, da), kb_a1),
        "wa2":  unif(ks[6], (da, r), kb_a2),
    }

    x = jax.random.normal(ks[7], (B, T, D), jnp.float32)
    lengths = jnp.array([12, 11, 10, 9, 7, 5, 3, 2], dtype=jnp.int32)  # descending

    out_final, lens_out, penalty = attention_lstm_forward(
        x, lengths, params, hidden=H, num_layers=L, bi_num=bi_num)
    out_final = jax.block_until_ready(out_final)
    penalty = jax.block_until_ready(penalty)

    ref_out, _, ref_pen = reference_forward(
        x, lengths, params, hidden=H, num_layers=L, bi_num=bi_num)

    assert out_final.shape == (B, r * bi_num * H)
    assert lens_out.shape == (B,)
    assert jnp.allclose(out_final, ref_out, atol=5e-3, rtol=5e-3), (
        "out_final mismatch, max abs diff = %g"
        % float(jnp.max(jnp.abs(out_final - ref_out))))
    assert jnp.allclose(penalty, ref_pen, atol=5e-3, rtol=5e-3), (
        "penalty mismatch: %g vs %g" % (float(penalty), float(ref_pen)))

    print("KERNEL_OK")
</pallas_src>

<mosaic_0001>
module attributes {stable_mosaic.version = 11 : i64} {
  func.func @kernel(%arg0: i32, %arg1: i32, %arg2: i32, %arg3: memref<1x1x8x16xf32, #tpu.memory_space<vmem>>, %arg4: memref<1x8x1xf32, #tpu.memory_space<vmem>>, %arg5: memref<1x16x128xf32, #tpu.memory_space<vmem>>, %arg6: memref<1x1x32x128xf32, #tpu.memory_space<vmem>>, %arg7: memref<1x2x32x128xf32, #tpu.memory_space<vmem>>, %arg8: memref<1x2x1x128xf32, #tpu.memory_space<vmem>>, %arg9: memref<1x1x8x32xf32, #tpu.memory_space<vmem>>, %arg10: memref<2x8x32xf32, #tpu.memory_space<vmem>>, %arg11: memref<2x8x32xf32, #tpu.memory_space<vmem>>) attributes {dimension_semantics = [#tpu.dimension_semantics<parallel>, #tpu.dimension_semantics<parallel>, #tpu.dimension_semantics<arbitrary>], iteration_bounds = array<i64: 2, 1, 12>, scalar_prefetch = 0 : i64, scratch_operands = 2 : i64, tpu.core_type = #tpu.core_type<tc>, window_params = [{transform_indices = @transform_0, window_bounds = array<i64: 1, 1, 8, 16>}, {transform_indices = @transform_1, window_bounds = array<i64: 1, 8, 1>}, {transform_indices = @transform_2, window_bounds = array<i64: 1, 16, 128>}, {transform_indices = @transform_3, window_bounds = array<i64: 1, 1, 32, 128>}, {transform_indices = @transform_4, window_bounds = array<i64: 1, 2, 32, 128>}, {transform_indices = @transform_5, window_bounds = array<i64: 1, 2, 1, 128>}, {transform_indices = @transform_6, window_bounds = array<i64: 1, 1, 8, 32>}]} {
    %c0_i32 = arith.constant 0 : i32
    %0 = arith.cmpi eq, %arg2, %c0_i32 : i32
    %1 = arith.extui %0 : i1 to i32
    %c0_i32_0 = arith.constant 0 : i32
    %2 = arith.cmpi ne, %1, %c0_i32_0 : i32
    scf.if %2 {
      %cst_82 = arith.constant 0.000000e+00 : f32
      %146 = vector.broadcast %cst_82 : f32 to vector<2x8x32xf32>
      %c0_83 = arith.constant 0 : index
      %c0_84 = arith.constant 0 : index
      %c0_85 = arith.constant 0 : index
      %147 = vector.load %arg10[%c0_83, %c0_84, %c0_85] : memref<2x8x32xf32, #tpu.memory_space<vmem>>, vector<2x8x32xf32>
      tpu.vector_store %arg10[%c0_83, %c0_84, %c0_85], %146 {strides = array<i32>} : memref<2x8x32xf32, #tpu.memory_space<vmem>>, vector<2x8x32xf32>,
      %cst_86 = arith.constant 0.000000e+00 : f32
      %148 = vector.broadcast %cst_86 : f32 to vector<2x8x32xf32>
      %c0_87 = arith.constant 0 : index
      %c0_88 = arith.constant 0 : index
      %c0_89 = arith.constant 0 : index
      %149 = vector.load %arg11[%c0_87, %c0_88, %c0_89] : memref<2x8x32xf32, #tpu.memory_space<vmem>>, vector<2x8x32xf32>
      tpu.vector_store %arg11[%c0_87, %c0_88, %c0_89], %148 {strides = array<i32>} : memref<2x8x32xf32, #tpu.memory_space<vmem>>, vector<2x8x32xf32>,
    } else {
    }
    %c0 = arith.constant 0 : index
    %c0_1 = arith.constant 0 : index
    %c0_2 = arith.constant 0 : index
    %3 = vector.load %arg4[%c0, %c0_1, %c0_2] : memref<1x8x1xf32, #tpu.memory_space<vmem>>, vector<1x8x1xf32>
    %4 = vector.shape_cast %3 : vector<1x8x1xf32> to vector<8x1xf32>
    %c0_3 = arith.constant 0 : index
    %c0_4 = arith.constant 0 : index
    %c0_5 = arith.constant 0 : index
    %c0_6 = arith.constant 0 : index
    %5 = vector.load %arg3[%c0_3, %c0_4, %c0_5, %c0_6] : memref<1x1x8x16xf32, #tpu.memory_space<vmem>>, vector<1x1x8x16xf32>
    %6 = vector.shape_cast %5 : vector<1x1x8x16xf32> to vector<8x16xf32>
    %c0_7 = arith.constant 0 : index
    %c0_8 = arith.constant 0 : index
    %c0_9 = arith.constant 0 : index
    %7 = vector.load %arg5[%c0_7, %c0_8, %c0_9] : memref<1x16x128xf32, #tpu.memory_space<vmem>>, vector<1x16x128xf32>
    %8 = vector.shape_cast %7 : vector<1x16x128xf32> to vector<16x128xf32>
    %c0_10 = arith.constant 0 : index
    %c0_11 = arith.constant 0 : index
    %c0_12 = arith.constant 0 : index
    %9 = vector.load %arg10[%c0_10, %c0_11, %c0_12] : memref<2x8x32xf32, #tpu.memory_space<vmem>>, vector<1x8x32xf32>
    %10 = vector.shape_cast %9 : vector<1x8x32xf32> to vector<8x32xf32>
    %c0_13 = arith.constant 0 : index
    %c0_14 = arith.constant 0 : index
    %c0_15 = arith.constant 0 : index
    %11 = vector.load %arg11[%c0_13, %c0_14, %c0_15] : memref<2x8x32xf32, #tpu.memory_space<vmem>>, vector<1x8x32xf32>
    %12 = vector.shape_cast %11 : vector<1x8x32xf32> to vector<8x32xf32>
    %cst = arith.constant dense<0.000000e+00> : vector<8x128xf32>
    %13 = tpu.matmul %6, %8, %cst {dimension_numbers = #tpu.dot_dimension_numbers<[1], [0], [0], [1], [0, 0, 1, 1], [], []>, precision = #tpu.contract_precision<fp32>} : vector<8x16xf32>, vector<16x128xf32>, vector<8x128xf32> -> vector<8x128xf32>
    %c0_16 = arith.constant 0 : index
    %c0_17 = arith.constant 0 : index
    %c0_18 = arith.constant 0 : index
    %c0_19 = arith.constant 0 : index
    %14 = vector.load %arg7[%c0_16, %c0_17, %c0_18, %c0_19] : memref<1x2x32x128xf32, #tpu.memory_space<vmem>>, vector<1x1x32x128xf32>
    %15 = vector.shape_cast %14 : vector<1x1x32x128xf32> to vector<32x128xf32>
    %cst_20 = arith.constant dense<0.000000e+00> : vector<8x128xf32>
    %16 = tpu.matmul %10, %15, %cst_20 {dimension_numbers = #tpu.dot_dimension_numbers<[1], [0], [0], [1], [0, 0, 1, 1], [], []>, precision = #tpu.contract_precision<fp32>} : vector<8x32xf32>, vector<32x128xf32>, vector<8x128xf32> -> vector<8x128xf32>
    %17 = arith.addf %13, %16 : vector<8x128xf32>
    %c0_21 = arith.constant 0 : index
    %c0_22 = arith.constant 0 : index
    %c0_23 = arith.constant 0 : index
    %c0_24 = arith.constant 0 : index
    %18 = vector.load %arg8[%c0_21, %c0_22, %c0_23, %c0_24] : memref<1x2x1x128xf32, #tpu.memory_space<vmem>>, vector<1x1x1x128xf32>
    %19 = vector.shape_cast %18 : vector<1x1x1x128xf32> to vector<1x128xf32>
    %20 = vector.broadcast %19 : vector<1x128xf32> to vector<8x128xf32>
    %21 = arith.addf %17, %20 : vector<8x128xf32>
    %22 = vector.extract_strided_slice %21 {offsets = [0, 0], sizes = [8, 32], strides = [1, 1]} : vector<8x128xf32> to vector<8x32xf32>
    %cst_25 = arith.constant 0.000000e+00 : f32
    %23 = vector.broadcast %cst_25 : f32 to vector<8x32xf32>
    %24 = arith.subf %23, %22 : vector<8x32xf32>
    %25 = math.exp %24 : vector<8x32xf32>
    %cst_26 = arith.constant 1.000000e+00 : f32
    %26 = vector.broadcast %cst_26 : f32 to vector<8x32xf32>
    %27 = arith.addf %26, %25 : vector<8x32xf32>
    %cst_27 = arith.constant 1.000000e+00 : f32
    %28 = vector.broadcast %cst_27 : f32 to vector<8x32xf32>
    %29 = arith.divf %28, %27 : vector<8x32xf32>
    %30 = vector.extract_strided_slice %21 {offsets = [0, 32], sizes = [8, 32], strides = [1, 1]} : vector<8x128xf32> to vector<8x32xf32>
    %cst_28 = arith.constant 0.000000e+00 : f32
    %31 = vector.broadcast %cst_28 : f32 to vector<8x32xf32>
    %32 = arith.subf %31, %30 : vector<8x32xf32>
    %33 = math.exp %32 : vector<8x32xf32>
    %cst_29 = arith.constant 1.000000e+00 : f32
    %34 = vector.broadcast %cst_29 : f32 to vector<8x32xf32>
    %35 = arith.addf %34, %33 : vector<8x32xf32>
    %cst_30 = arith.constant 1.000000e+00 : f32
    %36 = vector.broadcast %cst_30 : f32 to vector<8x32xf32>
    %37 = arith.divf %36, %35 : vector<8x32xf32>
    %38 = vector.extract_strided_slice %21 {offsets = [0, 64], sizes = [8, 32], strides = [1, 1]} : vector<8x128xf32> to vector<8x32xf32>
    %39 = math.tanh %38 : vector<8x32xf32>
    %40 = vector.extract_strided_slice %21 {offsets = [0, 96], sizes = [8, 32], strides = [1, 1]} : vector<8x128xf32> to vector<8x32xf32>
    %cst_31 = arith.constant 0.000000e+00 : f32
    %41 = vector.broadcast %cst_31 : f32 to vector<8x32xf32>
    %42 = arith.subf %41, %40 : vector<8x32xf32>
    %43 = math.exp %42 : vector<8x32xf32>
    %cst_32 = arith.constant 1.000000e+00 : f32
    %44 = vector.broadcast %cst_32 : f32 to vector<8x32xf32>
    %45 = arith.addf %44, %43 : vector<8x32xf32>
    %cst_33 = arith.constant 1.000000e+00 : f32
    %46 = vector.broadcast %cst_33 : f32 to vector<8x32xf32>
    %47 = arith.divf %46, %45 : vector<8x32xf32>
    %48 = arith.mulf %37, %12 : vector<8x32xf32>
    %49 = arith.mulf %29, %39 : vector<8x32xf32>
    %50 = arith.addf %48, %49 : vector<8x32xf32>
    %51 = math.tanh %50 : vector<8x32xf32>
    %52 = arith.mulf %47, %51 : vector<8x32xf32>
    %53 = vector.broadcast %4 : vector<8x1xf32> to vector<8x32xf32>
    %54 = arith.mulf %53, %52 : vector<8x32xf32>
    %cst_34 = arith.constant 1.000000e+00 : f32
    %55 = vector.broadcast %cst_34 : f32 to vector<8x1xf32>
    %56 = arith.subf %55, %4 : vector<8x1xf32>
    %57 = vector.broadcast %56 : vector<8x1xf32> to vector<8x32xf32>
    %58 = arith.mulf %57, %10 : vector<8x32xf32>
    %59 = arith.addf %54, %58 : vector<8x32xf32>
    %c0_35 = arith.constant 0 : index
    %c0_36 = arith.constant 0 : index
    %c0_37 = arith.constant 0 : index
    %60 = vector.load %arg10[%c0_35, %c0_36, %c0_37] : memref<2x8x32xf32, #tpu.memory_space<vmem>>, vector<1x8x32xf32>
    %61 = vector.shape_cast %60 : vector<1x8x32xf32> to vector<8x32xf32>
    %62 = vector.shape_cast %59 : vector<8x32xf32> to vector<1x8x32xf32>
    tpu.vector_store %arg10[%c0_35, %c0_36, %c0_37], %62 {strides = array<i32>} : memref<2x8x32xf32, #tpu.memory_space<vmem>>, vector<1x8x32xf32>,
    %63 = vector.broadcast %4 : vector<8x1xf32> to vector<8x32xf32>
    %64 = arith.mulf %63, %50 : vector<8x32xf32>
    %cst_38 = arith.constant 1.000000e+00 : f32
    %65 = vector.broadcast %cst_38 : f32 to vector<8x1xf32>
    %66 = arith.subf %65, %4 : vector<8x1xf32>
    %67 = vector.broadcast %66 : vector<8x1xf32> to vector<8x32xf32>
    %68 = arith.mulf %67, %12 : vector<8x32xf32>
    %69 = arith.addf %64, %68 : vector<8x32xf32>
    %c0_39 = arith.constant 0 : index
    %c0_40 = arith.constant 0 : index
    %c0_41 = arith.constant 0 : index
    %70 = vector.load %arg11[%c0_39, %c0_40, %c0_41] : memref<2x8x32xf32, #tpu.memory_space<vmem>>, vector<1x8x32xf32>
    %71 = vector.shape_cast %70 : vector<1x8x32xf32> to vector<8x32xf32>
    %72 = vector.shape_cast %69 : vector<8x32xf32> to vector<1x8x32xf32>
    tpu.vector_store %arg11[%c0_39, %c0_40, %c0_41], %72 {strides = array<i32>} : memref<2x8x32xf32, #tpu.memory_space<vmem>>, vector<1x8x32xf32>,
    %73 = vector.broadcast %4 : vector<8x1xf32> to vector<8x32xf32>
    %74 = arith.mulf %73, %52 : vector<8x32xf32>
    %c0_42 = arith.constant 0 : index
    %c0_43 = arith.constant 0 : index
    %c0_44 = arith.constant 0 : index
    %c0_45 = arith.constant 0 : index
    %75 = vector.load %arg6[%c0_42, %c0_43, %c0_44, %c0_45] : memref<1x1x32x128xf32, #tpu.memory_space<vmem>>, vector<1x1x32x128xf32>
    %76 = vector.shape_cast %75 : vector<1x1x32x128xf32> to vector<32x128xf32>
    %c1 = arith.constant 1 : index
    %c0_46 = arith.constant 0 : index
    %c0_47 = arith.constant 0 : index
    %77 = vector.load %arg10[%c1, %c0_46, %c0_47] : memref<2x8x32xf32, #tpu.memory_space<vmem>>, vector<1x8x32xf32>
    %78 = vector.shape_cast %77 : vector<1x8x32xf32> to vector<8x32xf32>
    %c1_48 = arith.constant 1 : index
    %c0_49 = arith.constant 0 : index
    %c0_50 = arith.constant 0 : index
    %79 = vector.load %arg11[%c1_48, %c0_49, %c0_50] : memref<2x8x32xf32, #tpu.memory_space<vmem>>, vector<1x8x32xf32>
    %80 = vector.shape_cast %79 : vector<1x8x32xf32> to vector<8x32xf32>
    %cst_51 = arith.constant dense<0.000000e+00> : vector<8x128xf32>
    %81 = tpu.matmul %74, %76, %cst_51 {dimension_numbers = #tpu.dot_dimension_numbers<[1], [0], [0], [1], [0, 0, 1, 1], [], []>, precision = #tpu.contract_precision<fp32>} : vector<8x32xf32>, vector<32x128xf32>, vector<8x128xf32> -> vector<8x128xf32>
    %c0_52 = arith.constant 0 : index
    %c1_53 = arith.constant 1 : index
    %c0_54 = arith.constant 0 : index
    %c0_55 = arith.constant 0 : index
    %82 = vector.load %arg7[%c0_52, %c1_53, %c0_54, %c0_55] : memref<1x2x32x128xf32, #tpu.memory_space<vmem>>, vector<1x1x32x128xf32>
    %83 = vector.shape_cast %82 : vector<1x1x32x128xf32> to vector<32x128xf32>
    %cst_56 = arith.constant dense<0.000000e+00> : vector<8x128xf32>
    %84 = tpu.matmul %78, %83, %cst_56 {dimension_numbers = #tpu.dot_dimension_numbers<[1], [0], [0], [1], [0, 0, 1, 1], [], []>, precision = #tpu.contract_precision<fp32>} : vector<8x32xf32>, vector<32x128xf32>, vector<8x128xf32> -> vector<8x128xf32>
    %85 = arith.addf %81, %84 : vector<8x128xf32>
    %c0_57 = arith.constant 0 : index
    %c1_58 = arith.constant 1 : index
    %c0_59 = arith.constant 0 : index
    %c0_60 = arith.constant 0 : index
    %86 = vector.load %arg8[%c0_57, %c1_58, %c0_59, %c0_60] : memref<1x2x1x128xf32, #tpu.memory_space<vmem>>, vector<1x1x1x128xf32>
    %87 = vector.shape_cast %86 : vector<1x1x1x128xf32> to vector<1x128xf32>
    %88 = vector.broadcast %87 : vector<1x128xf32> to vector<8x128xf32>
    %89 = arith.addf %85, %88 : vector<8x128xf32>
    %90 = vector.extract_strided_slice %89 {offsets = [0, 0], sizes = [8, 32], strides = [1, 1]} : vector<8x128xf32> to vector<8x32xf32>
    %cst_61 = arith.constant 0.000000e+00 : f32
    %91 = vector.broadcast %cst_61 : f32 to vector<8x32xf32>
    %92 = arith.subf %91, %90 : vector<8x32xf32>
    %93 = math.exp %92 : vector<8x32xf32>
    %cst_62 = arith.constant 1.000000e+00 : f32
    %94 = vector.broadcast %cst_62 : f32 to vector<8x32xf32>
    %95 = arith.addf %94, %93 : vector<8x32xf32>
    %cst_63 = arith.constant 1.000000e+00 : f32
    %96 = vector.broadcast %cst_63 : f32 to vector<8x32xf32>
    %97 = arith.divf %96, %95 : vector<8x32xf32>
    %98 = vector.extract_strided_slice %89 {offsets = [0, 32], sizes = [8, 32], strides = [1, 1]} : vector<8x128xf32> to vector<8x32xf32>
    %cst_64 = arith.constant 0.000000e+00 : f32
    %99 = vector.broadcast %cst_64 : f32 to vector<8x32xf32>
    %100 = arith.subf %99, %98 : vector<8x32xf32>
    %101 = math.exp %100 : vector<8x32xf32>
    %cst_65 = arith.constant 1.000000e+00 : f32
    %102 = vector.broadcast %cst_65 : f32 to vector<8x32xf32>
    %103 = arith.addf %102, %101 : vector<8x32xf32>
    %cst_66 = arith.constant 1.000000e+00 : f32
    %104 = vector.broadcast %cst_66 : f32 to vector<8x32xf32>
    %105 = arith.divf %104, %103 : vector<8x32xf32>
    %106 = vector.extract_strided_slice %89 {offsets = [0, 64], sizes = [8, 32], strides = [1, 1]} : vector<8x128xf32> to vector<8x32xf32>
    %107 = math.tanh %106 : vector<8x32xf32>
    %108 = vector.extract_strided_slice %89 {offsets = [0, 96], sizes = [8, 32], strides = [1, 1]} : vector<8x128xf32> to vector<8x32xf32>
    %cst_67 = arith.constant 0.000000e+00 : f32
    %109 = vector.broadcast %cst_67 : f32 to vector<8x32xf32>
    %110 = arith.subf %109, %108 : vector<8x32xf32>
    %111 = math.exp %110 : vector<8x32xf32>
    %cst_68 = arith.constant 1.000000e+00 : f32
    %112 = vector.broadcast %cst_68 : f32 to vector<8x32xf32>
    %113 = arith.addf %112, %111 : vector<8x32xf32>
    %cst_69 = arith.constant 1.000000e+00 : f32
    %114 = vector.broadcast %cst_69 : f32 to vector<8x32xf32>
    %115 = arith.divf %114, %113 : vector<8x32xf32>
    %116 = arith.mulf %105, %80 : vector<8x32xf32>
    %117 = arith.mulf %97, %107 : vector<8x32xf32>
    %118 = arith.addf %116, %117 : vector<8x32xf32>
    %119 = math.tanh %118 : vector<8x32xf32>
    %120 = arith.mulf %115, %119 : vector<8x32xf32>
    %121 = vector.broadcast %4 : vector<8x1xf32> to vector<8x32xf32>
    %122 = arith.mulf %121, %120 : vector<8x32xf32>
    %cst_70 = arith.constant 1.000000e+00 : f32
    %123 = vector.broadcast %cst_70 : f32 to vector<8x1xf32>
    %124 = arith.subf %123, %4 : vector<8x1xf32>
    %125 = vector.broadcast %124 : vector<8x1xf32> to vector<8x32xf32>
    %126 = arith.mulf %125, %78 : vector<8x32xf32>
    %127 = arith.addf %122, %126 : vector<8x32xf32>
    %c1_71 = arith.constant 1 : index
    %c0_72 = arith.constant 0 : index
    %c0_73 = arith.constant 0 : index
    %128 = vector.load %arg10[%c1_71, %c0_72, %c0_73] : memref<2x8x32xf32, #tpu.memory_space<vmem>>, vector<1x8x32xf32>
    %129 = vector.shape_cast %128 : vector<1x8x32xf32> to vector<8x32xf32>
    %130 = vector.shape_cast %127 : vector<8x32xf32> to vector<1x8x32xf32>
    tpu.vector_store %arg10[%c1_71, %c0_72, %c0_73], %130 {strides = array<i32>} : memref<2x8x32xf32, #tpu.memory_space<vmem>>, vector<1x8x32xf32>,
    %131 = vector.broadcast %4 : vector<8x1xf32> to vector<8x32xf32>
    %132 = arith.mulf %131, %118 : vector<8x32xf32>
    %cst_74 = arith.constant 1.000000e+00 : f32
    %133 = vector.broadcast %cst_74 : f32 to vector<8x1xf32>
    %134 = arith.subf %133, %4 : vector<8x1xf32>
    %135 = vector.broadcast %134 : vector<8x1xf32> to vector<8x32xf32>
    %136 = arith.mulf %135, %80 : vector<8x32xf32>
    %137 = arith.addf %132, %136 : vector<8x32xf32>
    %c1_75 = arith.constant 1 : index
    %c0_76 = arith.constant 0 : index
    %c0_77 = arith.constant 0 : index
    %138 = vector.load %arg11[%c1_75, %c0_76, %c0_77] : memref<2x8x32xf32, #tpu.memory_space<vmem>>, vector<1x8x32xf32>
    %139 = vector.shape_cast %138 : vector<1x8x32xf32> to vector<8x32xf32>
    %140 = vector.shape_cast %137 : vector<8x32xf32> to vector<1x8x32xf32>
    tpu.vector_store %arg11[%c1_75, %c0_76, %c0_77], %140 {strides = array<i32>} : memref<2x8x32xf32, #tpu.memory_space<vmem>>, vector<1x8x32xf32>,
    %141 = vector.broadcast %4 : vector<8x1xf32> to vector<8x32xf32>
    %142 = arith.mulf %141, %120 : vector<8x32xf32>
    %c0_78 = arith.constant 0 : index
    %c0_79 = arith.constant 0 : index
    %c0_80 = arith.constant 0 : index
    %c0_81 = arith.constant 0 : index
    %143 = vector.load %arg9[%c0_78, %c0_79, %c0_80, %c0_81] : memref<1x1x8x32xf32, #tpu.memory_space<vmem>>, vector<1x1x8x32xf32>
    %144 = vector.shape_cast %143 : vector<1x1x8x32xf32> to vector<8x32xf32>
    %145 = vector.shape_cast %142 : vector<8x32xf32> to vector<1x1x8x32xf32>
    tpu.vector_store %arg9[%c0_78, %c0_79, %c0_80, %c0_81], %145 {strides = array<i32>} : memref<1x1x8x32xf32, #tpu.memory_space<vmem>>, vector<1x1x8x32xf32>,
    return
  }
  func.func @transform_0(%arg0: i32, %arg1: i32, %arg2: i32) -> (i32, i32, i32, i32) {
    %c0_i32 = arith.constant 0 : i32
    %c0_i32_0 = arith.constant 0 : i32
    return %arg0, %arg2, %arg1, %c0_i32 : i32, i32, i32, i32
  }
  func.func @transform_1(%arg0: i32, %arg1: i32, %arg2: i32) -> (i32, i32, i32) {
    %c0_i32 = arith.constant 0 : i32
    %c0_i32_0 = arith.constant 0 : i32
    return %arg2, %arg1, %c0_i32 : i32, i32, i32
  }
  func.func @transform_2(%arg0: i32, %arg1: i32, %arg2: i32) -> (i32, i32, i32) {
    %c0_i32 = arith.constant 0 : i32
    %c0_i32_0 = arith.constant 0 : i32
    %c0_i32_1 = arith.constant 0 : i32
    return %arg0, %c0_i32, %c0_i32_0 : i32, i32, i32
  }
  func.func @transform_3(%arg0: i32, %arg1: i32, %arg2: i32) -> (i32, i32, i32, i32) {
    %c0_i32 = arith.constant 0 : i32
    %c0_i32_0 = arith.constant 0 : i32
    %c0_i32_1 = arith.constant 0 : i32
    %c0_i32_2 = arith.constant 0 : i32
    return %arg0, %c0_i32, %c0_i32_0, %c0_i32_1 : i32, i32, i32, i32
  }
  func.func @transform_4(%arg0: i32, %arg1: i32, %arg2: i32) -> (i32, i32, i32, i32) {
    %c0_i32 = arith.constant 0 : i32
    %c0_i32_0 = arith.constant 0 : i32
    %c0_i32_1 = arith.constant 0 : i32
    %c0_i32_2 = arith.constant 0 : i32
    return %arg0, %c0_i32, %c0_i32_0, %c0_i32_1 : i32, i32, i32, i32
  }
  func.func @transform_5(%arg0: i32, %arg1: i32, %arg2: i32) -> (i32, i32, i32, i32) {
    %c0_i32 = arith.constant 0 : i32
    %c0_i32_0 = arith.constant 0 : i32
    %c0_i32_1 = arith.constant 0 : i32
    %c0_i32_2 = arith.constant 0 : i32
    return %arg0, %c0_i32, %c0_i32_0, %c0_i32_1 : i32, i32, i32, i32
  }
  func.func @transform_6(%arg0: i32, %arg1: i32, %arg2: i32) -> (i32, i32, i32, i32) {
    %c0_i32 = arith.constant 0 : i32
    %c0_i32_0 = arith.constant 0 : i32
    return %arg0, %arg2, %arg1, %c0_i32 : i32, i32, i32, i32
  }
}

</mosaic_0001>

<bundles_post_ra>
// kernel: tpu_custom_call.1
= control target key start
LH: loop header
LB: loop body
LE: loop exit
PB: predicated region body
PF: predicated region fallthrough
CT: control target
= control target key end

     0   :  { %s2359_s0 = inlined_call_operand.hbm [shape: f32[2,12,8,16], index: 0, kind: input, shape index: {}]   ;;  %s2360_s1 = inlined_call_operand.vmem [shape: f32[12,8,1], index: 1, kind: input, shape index: {}]   ;;  %s2361_s2 = inlined_call_operand.vmem [shape: f32[2,16,128], index: 2, kind: input, shape index: {}]   ;;  %s2362_s3 = inlined_call_operand.vmem [shape: f32[2,1,32,128], index: 3, kind: input, shape index: {}]   ;;  %s2363_s4 = inlined_call_operand.hbm [shape: f32[2,2,32,128], index: 4, kind: input, shape index: {}]   ;;  %s2364_s5 = inlined_call_operand.vmem [shape: f32[2,2,1,128], index: 5, kind: input, shape index: {}]   ;;  %s2365_s6 = inlined_call_operand.hbm [shape: f32[2,12,8,32], index: 6, kind: output, shape index: {}]  }
   0x1   :  { %2376 = sst [smem:[#allocation23_spill]] %s2359_s0 }
   0x2   :  { %2377 = sst [smem:[#allocation24_spill]] %s2363_s4 }
   0x3   :  { %2378 = sst [smem:[#allocation25_spill]] %s2364_s5 }
   0x4   :  { %2379 = sst [smem:[#allocation26_spill]] %s2365_s6 }
   0x5   :  { %11 = vsyncpa [#allocation5], 0 }
   0x6   :  { %13 = vsyncpa [#allocation5 + $0x1], 0 }
   0x7   :  { %14 = vsyncpa [#allocation8], 0 }
   0x8   :  { %16 = vsyncpa [#allocation8 + $0x1], 0 }
   0x9   :  { %17 = vsyncpa [#allocation6], 0 }
   0xa   :  { %19 = vsyncpa [#allocation6 + $0x1], 0  ;;  %s1926_s21 = smov 0   ;;  %s1928_s22 = smov 0  }
   0xb   :  { %s1930_s23 = smov 0   ;;  %s1932_s24 = smov 0  }
   0xc   :  { %s1934_s25 = smov 0   ;;  %s1936_s26 = smov 0  }
   0xd   :  { %s1938_s27 = smov 0   ;;  %s1940_s28 = smov 0  }
   0xe   :  { %s1942_s29 = smov 0   ;;  %s1944_s30 = smov 0  }
   0xf   :  { %s1946_s7 = smov 0  }
  0x10 LB: > { %2380 = sst [smem:[#allocation13_spill]] %s1854_s24  ;;  %s1528_s8 = sadd.s32 4294967295, %s1882_s7   ;;  %s1882_s7 = sphi %s1946_s7, %s25_s7   ;;  %s1878_s30 = sphi %s1944_s30, %s2412_s30   ;;  %s1874_s29 = sphi %s1942_s29, %s2411_s29   ;;  %s1870_s28 = sphi %s1940_s28, %s2410_s28   ;;  %s1866_s27 = sphi %s1938_s27, %s2409_s27   ;;  %s1862_s26 = sphi %s1936_s26, %s2408_s26   ;;  %s1858_s25 = sphi %s1934_s25, %s2407_s25   ;;  %s1854_s24 = sphi %s1932_s24, %s2406_s24   ;;  %s1850_s23 = sphi %s1930_s23, %s2415_s23   ;;  %s1846_s22 = sphi %s1928_s22, %s2414_s22   ;;  %s1842_s21 = sphi %s1926_s21, %s2413_s21  }
  0x11   : > { %2381 = sst [smem:[#allocation14_spill]] %s1858_s25  ;;  %s1529_s9 = sadd.s32 4294967294, %s1882_s7  }
  0x12   : > { %2382 = sst [smem:[#allocation15_spill]] %s1862_s26  ;;  %s37_s10 = sadd.s32 1, %s1874_s29 }
  0x13   : > { %2383 = sst [smem:[#allocation16_spill]] %s1874_s29  ;;  %s44_s11 = sadd.s32 1, %s1878_s30 }
  0x14   : > { %2384 = sst [smem:[#allocation17_spill]] %s1878_s30  ;;  %p38_p0 = scmp.ge.s32.totalorder %s37_s10, 12 }
  0x15   : > { %s55_s12 = sadd.s32 1, %s1862_s26  ;;  %p62_p1 = scmp.ne.s32.totalorder %s1862_s26, %s1858_s25 }
  0x16   : > { %p63_p2 = scmp.eq.s32.totalorder %s1882_s7, 0  ;;  %s2417_s10 = smov (%p38_p0, %s37_s10), 0 }
  0x17   : > { %2385 = sst [smem:[#allocation18_spill]] %s2417_s10  ;;  %s2419_s11 = smov (!%p38_p0, %s44_s11), %s1878_s30 }
  0x18   : > { %s49_s13 = ssub.s32 %s1874_s29, %s2417_s10  ;;  %p1999_p3 = por %p63_p2, %p62_p1 }
  0x19   : > { %p46_p4 = scmp.ge.s32.totalorder %s2419_s11, 2  ;;  %p2368_p5 = scmp.ne.s32.totalorder %s1858_s25, %s1854_s24 }
  0x1a   : > { %p2005_p6 = scmp.eq.s32.totalorder %s1528_s8, 0  ;;  %s161_s16 = sadd.s32 1, %s1850_s23 }
  0x1b   : > { %s2421_s11 = smov (%p46_p4, %s2419_s11), 0  ;;  %p168_p8 = scmp.ne.s32.totalorder %s1850_s23, %s1846_s22 }
  0x1c   : > { %2388 = sst [smem:[#allocation19_spill]] %s2421_s11  ;;  %p2017_p7 = por %p2005_p6, %p2368_p5 }
  0x1d   : > { %s48_s18 = ssub.s32 %s1878_s30, %s2421_s11  ;;  %p174_p9 = scmp.ne.s32.totalorder %s1846_s22, %s1842_s21 }
  0x1e   : > { %s50_s19 = sor.u32 %s49_s13, %s48_s18  ;;  %p159_p10 = scmp.eq.s32.totalorder %s48_s18, 0 }
  0x1f   : > { %p53_p11 = scmp.eq.s32.totalorder %s50_s19, 0  ;;  %p2029_p12 = por %p168_p8, %p63_p2 }
  0x20   : > { %s2034_s10 = scalar_select %p159_p10, %s1850_s23, %s161_s16  }
  0x21   : > { %s2037_s6 = scalar_select %p53_p11, %s1862_s26, %s55_s12  }
  0x22   : > { %2391 = sst [smem:[#allocation20_spill]] %s2034_s10  ;;  %p2041_p13 = por %p174_p9, %p2005_p6 }
  0x23   : > { %2392 = sst [smem:[#allocation21_spill]] %s2037_s6  ;;  %p228_p0 = scmp.eq.s32.totalorder %s1528_s8, 23 }
  0x24   : > { %p234_p4 = scmp.eq.s32.totalorder %s1529_s9, 23  ;;  %p1579_p2 = scmp.lt.s32.totalorder %s1882_s7, 24 }
  0x25   : > { %p2048_p5 = por %p228_p0, %p62_p1  ;;  %p2395_p8 = scmp.ne.s32.totalorder %s1858_s25, %s1854_s24 }
  0x26   : > { %s254_s12 = sand.u32 1, %s1862_s26   ;;  %s1560_s16 = smul.u32 12, %s1878_s30 }
  0x27   : > { %p2056_p10 = por %p234_p4, %p2395_p8  ;;  %s1532_s15 = sshll.u32 %s254_s12, 3 }
  0x28   : > { %s258_s18 = scalar_lea.vmem [#allocation4], %s1532_s15  ;;  %p1569_p6 = pnand %p1579_p2, %p1999_p3 }
  0x29   : > { %s2396_s13 = scalar_select %p2056_p10, 1, 0 }
  0x2a   : > { %s269_s8 = sshll.u32 %s258_s18, 4  ;;  %s263_s9 = sadd.s32 %s1874_s29, %s1560_s16  ;;  %s270_s8 = int_to_ptr.vmem [resolvable:$true] %s269_s8 }
  0x2b   : > { %2397 = sst [smem:[#allocation22_spill]] %s2396_s13  ;;  %s1533_s19 = sshll.u32 %s263_s9, 3 }
  0x2c   : > { %s2398_s0 = sld [smem:[#allocation23_spill]]  ;;  %p2070_p1 = pnand %p1579_p2, %p2029_p12 }
  0x2d   : > { %p1537_p9 = scmp.ge.s32.totalorder %s1882_s7, 1  ;;  %s255_s15 = scalar_lea.sflag [#allocation5], %s254_s12 }
  0x2e   : > { %p329_p11 = scmp.lt.s32.totalorder %s1882_s7, 25  ;;  %s302_s14 = sand.u32 1, %s1850_s23  }
  0x2f   : > { %s1534_s16 = sshll.u32 %s302_s14, 6  ;;  %s1557_s18 = sshll.u32 %s1878_s30, 6 }
  0x30   : > { %p330_p3 = pnand %p1537_p9, %p329_p11  ;;  %s306_s9 = scalar_lea.vmem [#allocation7], %s1534_s16 }
  0x31   : > { %s314_s29 = sshll.u32 %s306_s9, 4  ;;  %s2400_s4 = sld [smem:[#allocation24_spill]]  ;;  %s315_s29 = int_to_ptr.vmem [resolvable:$true] %s314_s29 }
  0x32   : > { %s265_s10 = scalar_lea.hbm %s2398_s0, %s1533_s19  ;;  %s1884_s0 = smov 128  }
  0x33   : > { %s267_s26 = sshll.u32 %s265_s10, 4  ;;  %s303_s10 = scalar_lea.sflag [#allocation8], %s302_s14  ;;  %s268_s26 = int_to_ptr.hbm [resolvable:$true] %s267_s26 }
  0x34   : > { %1571 = dma.hbm_to_vmem [thread:$0]  (!%p1569_p6), %s268_s26, 128, %s270_s8, %s255_s15  }
  0x35   : > { %s1885_s24 = smov 8   ;;  %333 = sbr.rel (%p330_p3) target bundleno = 1332 (0x534), region = 44 }
  0x36   : > { %s2084_s26 = sand.u32 (!%p330_p3), 1, %s1858_s25  }
  0x37   : > { %s311_s20 = scalar_lea.hbm %s2400_s4, %s1557_s18  ;;  %s1538_s12 = sshll.u32 (!%p330_p3), %s2084_s26, 3 }
  0x38   : > { %s312_s19 = sshll.u32 %s311_s20, 4  ;;  %s336_s8 = scalar_lea.sflag (!%p330_p3), [#allocation5], %s2084_s26  ;;  %s313_s19 = int_to_ptr.hbm [resolvable:$true] %s312_s19 }
  0x39   : > { %1574 = dma.hbm_to_vmem [thread:$0]  (!%p2070_p1), %s313_s19, 1024, %s315_s29, %s303_s10, %s1884_s0, %s1884_s0, %s1885_s24  }
  0x3a   : > { %s2088_s15 = scalar_lea.vmem [#allocation4], %s1538_s12 }
  0x3b   : > { %1829 = dma.done.wait (%p2017_p7), %s336_s8, 128  }
  0x3c   : > { %1831 = vsyncadd (%p2017_p7), %s336_s8, 4294967168  ;;  %s345_s13 = sand.u32 1, %s1846_s22  }
  0x3d   : > { %s1539_s0 = sshll.u32 %s345_s13, 6  ;;  %s346_s24 = scalar_lea.sflag [#allocation8], %s345_s13 }
  0x3e   : > { %s2095_s29 = scalar_lea.vmem [#allocation7], %s1539_s0 }
  0x3f   : > { %1833 = dma.done.wait (%p2041_p13), %s346_s24, 1024  }
  0x40   : > { %1835 = vsyncadd (%p2041_p13), %s346_s24, 4294966272  ;;  %p405_p12 = scmp.lt.s32.totalorder %s1866_s27, 11  ;;  %p412_p0 = scmp.lt.s32.totalorder %s1870_s28, 1 }
  0x41   : > { %s2123_s18 = scalar_lea.vmem [#allocation9], %s1538_s12  ;;  %p1547_p7 = scmp.ne.s32.totalorder %s1866_s27, 0 }
  0x42   : > { %s406_s17 = scalar_select %p405_p12, %s1866_s27, 11 }
  0x43   : > { %s413_s14 = scalar_select %p412_p0, %s1870_s28, 1 }
  0x44   : > { %s1541_s16 = sshll.u32 %s406_s17, 3  ;;  %s2401_s17 = sld [smem:[#allocation25_spill]] }
  0x45   : > { %s2108_s6 = scalar_lea.vmem %s2360_s1, %s1541_s16  ;;  %s1558_s11 = sshll.u32 %s413_s14, 4 }
  0x46   : > { %s416_s5 = scalar_lea.vmem %s2361_s2, %s1558_s11  ;;  %s1559_s10 = sshll.u32 %s413_s14, 5 }
  0x47   : > { %s2116_s0 = scalar_lea.vmem %s2362_s3, %s1559_s10  ;;  %s1546_s24 = sshll.u32 %s413_s14, 1 }
  0x48   : > { %429 = sbr.rel (%p1547_p7) target bundleno = 82 (0x52), region = 56 }
  0x4a   : > { %s2121_s25 = scalar_lea.vmem %s2401_s17, %s1546_s24 }
  0x4d   : > { %vm430_vm0 = vcmask 261120   ;;  %v1886_v0 = vmov 0.0  }
  0x4e   : > { %431 = vst.msk [vmem:[#allocation2] sm:$0xff] %vm430_vm0, %v1886_v0 }
  0x4f   : > { %432 = vst.msk [vmem:[#allocation2 + $0x8] sm:$0xff] %vm430_vm0, %v1886_v0 }
  0x50   : > { %433 = vst.msk [vmem:[#allocation3] sm:$0xff] %vm430_vm0, %v1886_v0 }
  0x51   : > { %434 = vst.msk [vmem:[#allocation3 + $0x8] sm:$0xff] %vm430_vm0, %v1886_v0 }
  0x52 PF: > { %v444_v1 = vld [vmem:[%s2095_s29 + $0x18] sm:$0xff]  ;;  %v443_v2 = vld [vmem:[%s2095_s29 + $0x10] sm:$0xff]  ;;  %v442_v3 = vld [vmem:[%s2095_s29 + $0x8] sm:$0xff]  ;;  %vm445_vm1 = vcmask 261120   ;;  %vm634_vm2 = vcmask 130048   ;;  %s1887_s4 = smov 64  }
  0x53   : > { %v2129_v4 = vand.u32 4294901760, %v444_v1  ;;  %v2131_v5 = vand.u32 4294901760, %v443_v2  ;;  %v2133_v6 = vand.u32 4294901760, %v442_v3  ;;  %v441_v7 = vld [vmem:[%s2095_s29] sm:$0xff]  ;;  %v438_v9 = vld [vmem:[%s416_s5 + $0x8] sm:$0xff]  ;;  %v437_v13 = vld [vmem:[%s416_s5] sm:$0xff] }
  0x54   : > { %v2138_v10 = vand.u32 4294901760, %v441_v7  ;;  %v2142_v12 = vand.u32 4294901760, %v438_v9  ;;  %v436_v14 = vld [vmem:[%s2088_s15] sm:$0xff]  ;;  %v2154_v21 = vand.u32 4294901760, %v437_v13  ;;  %s1888_s30 = smov 32   ;;  %s1561_s12 = smul.u32 12, %s1870_s28 }
  0x55   : > { %v2136_v8 = vld [vmem:[#allocation2] sm:$0xff]  ;;  %v491_v15 = vsub.f32 %v444_v1, %v2129_v4  ;;  %462 = vmatpush.msra.mxu0 %v2129_v4  ;;  %v497_v16 = vsub.f32 %v443_v2, %v2131_v5  ;;  %562 = vmatpush.msra.mxu3 %v2129_v4  ;;  %v503_v17 = vsub.f32 %v442_v3, %v2133_v6  ;;  %v636_v22 = vsel %vm634_vm2, %v436_v14, 0  ;;  %s2402_s9 = sld [smem:[#allocation26_spill]]  ;;  %s1361_s11 = sshll.u32 %s2123_s18, 4  ;;  %s1362_s11 = int_to_ptr.vmem [resolvable:$true] %s1361_s11 }
  0x56   : > { %v447_v11 = vsel %vm445_vm1, %v2136_v8, 0  ;;  %v509_v19 = vsub.f32 %v441_v7, %v2138_v10  ;;  %v680_v20 = vsub.f32 %v438_v9, %v2142_v12  ;;  %v686_v29 = vsub.f32 %v437_v13, %v2154_v21  ;;  %s1357_s15 = sadd.s32 %s1866_s27, %s1561_s12  ;;  %s1346_s19 = scalar_lea.sflag [#allocation6], %s2084_s26 }
  0x57   : > { %v2150_v18 = vand.u32 4294901760, %v447_v11  ;;  %533 = vmatpush.msra.mxu2 %v491_v15  ;;  %464 = vmatpush.msra.mxu0 %v2131_v5  ;;  %v492_v23 = vand.u32 4294901760, %v491_v15  ;;  %v498_v24 = vand.u32 4294901760, %v497_v16  ;;  %v504_v26 = vand.u32 4294901760, %v503_v17  ;;  %v2180_v14 = vld [vmem:[#allocation3] sm:$0xff] }
  0x58   : > { %564 = vmatpush.msra.mxu3 %v2131_v5  ;;  %v681_v27 = vand.u32 4294901760, %v680_v20  ;;  %v510_v28 = vand.u32 4294901760, %v509_v19  ;;  %v656_v30 = vand.u32 4294901760, %v636_v22  ;;  %v687_v36 = vand.u32 4294901760, %v686_v29 }
  0x59   : > { %v470_v25 = vsub.f32 %v447_v11, %v2150_v18  ;;  %536 = vmatpush.msra.mxu2 %v497_v16  ;;  %v493_v31 = vsub.f32 %v491_v15, %v492_v23  ;;  %466 = vmatpush.msra.mxu0 %v2133_v6  ;;  %v499_v32 = vsub.f32 %v497_v16, %v498_v24 }
  0x5a   : > { %v505_v33 = vsub.f32 %v503_v17, %v504_v26  ;;  %566 = vmatpush.msra.mxu3 %v2133_v6  ;;  %v682_v35 = vsub.f32 %v680_v20, %v681_v27  ;;  %v657_v37 = vsub.f32 %v636_v22, %v656_v30  ;;  %v511_v41 = vsub.f32 %v509_v19, %v510_v28 }
  0x5b   : > { %v471_v34 = vand.u32 4294901760, %v470_v25  ;;  %v494_v38 = vand.u32 4294901760, %v493_v31  ;;  %539 = vmatpush.msra.mxu2 %v503_v17  ;;  %v500_v39 = vand.u32 4294901760, %v499_v32  ;;  %468 = vmatpush.msra.mxu0 %v2138_v10  ;;  %v688_v43 = vsub.f32 %v686_v29, %v687_v36  ;;  %s1776_s8 = scalar_lea.hbm %s2402_s9, 192 }
  0x5c   : > { %568 = vmatpush.msra.mxu3 %v2138_v10  ;;  %v683_v42 = vand.u32 4294901760, %v682_v35  ;;  %v658_v44 = vand.u32 4294901760, %v657_v37  ;;  %v506_v45 = vand.u32 4294901760, %v505_v33  ;;  %v512_v49 = vand.u32 4294901760, %v511_v41 }
  0x5d   : > { %v472_v40 = vsub.f32 %v470_v25, %v471_v34  ;;  %591 = vmatpush.msrb.mxu0 %v492_v23  ;;  %495 = vmatpush.msra.mxu1 %v494_v38  ;;  %v689_v47 = vand.u32 4294901760, %v688_v43  ;;  %v1551_v38 = vld [vmem:[%s2095_s29 + $0x38] sm:$0xff] }
  0x5e   : > { %542 = vmatpush.msra.mxu2 %v509_v19  ;;  %572 = vmatmul.f32.vlgmr.msra.gmra.mxu3 %v471_v34  ;;  %v659_v48 = vsub.f32 %v657_v37, %v658_v44  ;;  %v2185_v19 = vld [vmem:[%s2108_s6] sm:$0xff]  ;;  %v2200_v41 = vand.u32 4294901760, %v1551_v38 }
  0x5f   : > { %v473_v46 = vand.u32 4294901760, %v472_v40  ;;  %545 = vmatmul.f32.vlgmr.msra.gmra.mxu2 %v470_v25  ;;  %501 = vmatpush.msra.mxu1 %v500_v39  ;;  %v1550_v39 = vld [vmem:[%s2095_s29 + $0x30] sm:$0xff]  ;;  %v1549_v40 = vld [vmem:[%s2095_s29 + $0x28] sm:$0xff] }
  0x60   : > { %653 = vmatpush.msrb.mxu2 %v2142_v12  ;;  %684 = vmatpush.msrb.mxu3 %v683_v42  ;;  %v660_v50 = vand.u32 4294901760, %v659_v48  ;;  %v2202_v42 = vand.u32 4294901760, %v1550_v39  ;;  %v2204_v43 = vand.u32 4294901760, %v1549_v40 }
  0x61   : > { %474 = vmatmul.f32.vlgmr.msra.gmra.mxu0 %v473_v46  ;;  %507 = vmatpush.msra.mxu1 %v506_v45  ;;  %v2207_v45 = vld [vmem:[#allocation2 + $0x8] sm:$0xff]  ;;  %v881_v46 = vld [vmem:[%s2116_s0 + $0x18] sm:$0xff] }
  0x62   : > { %595 = vmatpush.msrb.mxu0 %v498_v24  ;;  %655 = vmatpush.msrb.mxu2 %v2154_v21  ;;  %v892_v48 = vsel %vm445_vm1, %v2207_v45, 0 }
  0x63   : > { %690 = vmatpush.msrb.mxu3 %v689_v47  ;;  %513 = vmatpush.msra.mxu1 %v512_v49  ;;  %v2214_v49 = vand.u32 4294901760, %v881_v46 }
  0x64   : > { %599 = vmatpush.msrb.mxu0 %v504_v26  ;;  %515 = vmatmul.f32.vlgmr.msra.gmra.mxu1 %v2150_v18 }
  0x65   : > { %764 = vmatpush.msra.mxu2 %v681_v27  ;;  %622 = vmatpush.msrb.mxu1 %v2129_v4 }
  0x66   : > { %603 = vmatpush.msrb.mxu0 %v510_v28  ;;  %692 = vmatmul.f32.vlgmr.msrb.gmra.mxu3 %v656_v30 }
  0x67   : > { %661 = vmatmul.f32.vlgmr.msrb.gmra.mxu2 %v660_v50  ;;  %624 = vmatpush.msrb.mxu1 %v2131_v5  ;;  %v880_v50 = vld [vmem:[%s2116_s0 + $0x10] sm:$0xff] }
  0x68   : > { %712 = vmatpush.msra.mxu0 %v680_v20  ;;  %789 = vmatpush.msra.mxu3 %v2142_v12 }
  0x69   : > { %605 = vmatmul.f32.vlgmr.msrb.gmra.mxu0 %v2150_v18  ;;  %626 = vmatpush.msrb.mxu1 %v2133_v6 }
  0x6a   : > { %768 = vmatpush.msra.mxu2 %v687_v36  ;;  %715 = vmatpush.msra.mxu0 %v686_v29 }
  0x6b   : > { %791 = vmatpush.msra.mxu3 %v2154_v21  ;;  %628 = vmatpush.msrb.mxu1 %v2138_v10  ;;  %v1678_v10 = vld [vmem:[%s2121_s25] ss:$0 sm:$0xff] }
  0x6c   : > { %630 = vmatmul.f32.vlgmr.msrb.gmra.mxu1 %v2150_v18  ;;  %907 = vmatpush.msrb.mxu0 %v2200_v41 }
  0x6d   : > { %737 = vmatpush.msra.mxu1 %v2142_v12  ;;  %1007 = vmatpush.msrb.mxu3 %v2200_v41 }
  0x6e   : > { %793 = vmatmul.f32.vlgmr.msra.gmra.mxu3 %v656_v30  ;;  %909 = vmatpush.msrb.mxu0 %v2202_v42 }
  0x6f   : > { %770 = vmatmul.f32.vlgmr.msra.gmra.mxu2 %v656_v30  ;;  %739 = vmatpush.msra.mxu1 %v2154_v21  ;;  %v1889_v21 = vmov 0  }
  0x70   : > { %1676 = vset.pattern.permute.xlu2 %v1889_v21  ;;  %1677 = vset.pattern.permute.xlu0 %v1889_v21 }
  0x71   : > { %718 = vmatmul.f32.vlgmr.msra.gmra.mxu0 %v657_v37  ;;  %845 = vperm.xlu2 %1676, %v2185_v19  }
  0x72   : > { %1009 = vmatpush.msrb.mxu3 %v2202_v42  ;;  %911 = vmatpush.msrb.mxu0 %v2204_v43 }
  0x74   : > { %743 = vmatmul.f32.vlgmr.msra.gmra.mxu1 %v658_v44  ;;  %v1548_v44 = vld [vmem:[%s2095_s29 + $0x20] sm:$0xff]  ;;  %1011 = vmatpush.msrb.mxu3 %v2204_v43  ;;  %s1554_s29 = sshll.u32 %s1357_s15, 3 }
  0x75   : > { %v2210_v47 = vand.u32 4294901760, %v1548_v44  ;;  %s1359_s6 = scalar_lea.hbm %s2402_s9, %s1554_s29 }
  0x76   : > { %s1363_s20 = sshll.u32 %s1359_s6, 4  ;;  %s1364_s20 = int_to_ptr.hbm [resolvable:$true] %s1363_s20 }
  0x77   : > { %913 = vmatpush.msrb.mxu0 %v2210_v47  ;;  %1013 = vmatpush.msrb.mxu3 %v2210_v47  ;;  %s1770_s5 = sshra.s32 %s1364_s20, 4  ;;  %s1771_s5 = int_to_ptr.hbm [resolvable:$true] %s1770_s5 }
  0x78   : > { %s1772_s10 = scalar_lea.hbm %s1771_s5, 8  ;;  %p1777_p8 = scmp.lt.s32.totalorder %s1771_s5, %s2402_s9 }
  0x79   : > { %p1773_p13 = scmp.ne.s32.totalorder %s1771_s5, %s1772_s10  ;;  %p1778_p6 = scmp.lt.s32.totalorder %s1776_s8, %s1772_s10 }
  0x7b   : > { %p1774_p4 = pnand %p1773_p13, %p2048_p5  ;;  %p1779_p1 = por %p1778_p6, %p1777_p8 }
  0x7d   : > { %p1775_p2 = pneg %p1774_p4 }
  0x7f   : > { %p1780_p9 = pnand %p1779_p1, %p1775_p2 }
  0xde   : > { %v475_v51 = vpop.f32.mrf.mxu0 }
  0xe1   : > { %v516_v52 = vpop.f32.mrf.mxu1  ;;  %v573_v55 = vpop.f32.mrf.mxu3 }
  0xe2   : > { %v546_v53 = vpop.f32.mrf.mxu2  ;;  %v517_v54 = vadd.f32 %v516_v52, %v475_v51  ;;  %v936_v51 = vsub.f32 %v1551_v38, %v2200_v41  ;;  %v942_v52 = vsub.f32 %v1550_v39, %v2202_v42 }
  0xe4   : > { %v547_v56 = vadd.f32 %v546_v53, %v517_v54  ;;  %v948_v53 = vsub.f32 %v1549_v40, %v2204_v43  ;;  %v914_v54 = vand.u32 4294901760, %v892_v48  ;;  %978 = vmatpush.msrb.mxu2 %v936_v51 }
  0xe6   : > { %v606_v57 = vpop.f32.mrf.mxu0  ;;  %v574_v58 = vadd.f32 %v573_v55, %v547_v56  ;;  %v954_v55 = vsub.f32 %v1548_v44, %v2210_v47  ;;  %v2224_v56 = vsub.f32 %v881_v46, %v2214_v49  ;;  %981 = vmatpush.msrb.mxu2 %v942_v52 }
  0xe8   : > { %v607_v59 = vadd.f32 %v606_v57, %v574_v58  ;;  %v2226_v57 = vand.u32 4294901760, %v880_v50  ;;  %v937_v58 = vand.u32 4294901760, %v936_v51  ;;  %984 = vmatpush.msrb.mxu2 %v948_v53 }
  0xe9   : > { %v631_v60 = vpop.f32.mrf.mxu1  ;;  %v693_v63 = vpop.f32.mrf.mxu3 }
  0xea   : > { %v662_v61 = vpop.f32.mrf.mxu2  ;;  %v632_v62 = vadd.f32 %v631_v60, %v607_v59  ;;  %v943_v59 = vand.u32 4294901760, %v942_v52  ;;  %v949_v60 = vand.u32 4294901760, %v948_v53  ;;  %1036 = vmatpush.msra.mxu0 %v937_v58  ;;  %987 = vmatpush.msrb.mxu2 %v954_v55 }
  0xec   : > { %v663_v0 = vadd.f32 %v662_v61, %v632_v62  ;;  %v915_v61 = vsub.f32 %v892_v48, %v914_v54  ;;  %v955_v62 = vand.u32 4294901760, %v954_v55  ;;  %1040 = vmatpush.msra.mxu0 %v943_v59  ;;  %1097 = vmatpush.msra.mxu2 %v2214_v49 }
  0xee   : > { %v719_v1 = vpop.f32.mrf.mxu0  ;;  %v694_v2 = vadd.f32 %v693_v63, %v663_v0  ;;  %v1127_v63 = vand.u32 4294901760, %v2224_v56  ;;  %v2232_v0 = vsub.f32 %v880_v50, %v2226_v57  ;;  %1044 = vmatpush.msra.mxu0 %v949_v60  ;;  %990 = vmatmul.f32.vlgmr.msrb.gmra.mxu2 %v915_v61 }
  0xef   : > { %1099 = vmatpush.msra.mxu2 %v2226_v57 }
  0xf0   : > { %v720_v3 = vadd.f32 %v719_v1, %v694_v2  ;;  %v938_v1 = vsub.f32 %v936_v51, %v937_v58  ;;  %v944_v2 = vsub.f32 %v942_v52, %v943_v59  ;;  %1048 = vmatpush.msra.mxu0 %v955_v62 }
  0xf1   : > { %v744_v4 = vpop.f32.mrf.mxu1  ;;  %v794_v7 = vpop.f32.mrf.mxu3 }
  0xf2   : > { %v771_v5 = vpop.f32.mrf.mxu2  ;;  %v745_v6 = vadd.f32 %v744_v4, %v720_v3  ;;  %v950_v3 = vsub.f32 %v948_v53, %v949_v60  ;;  %v916_v4 = vand.u32 4294901760, %v915_v61 }
  0xf4   : > { %v772_v9 = vadd.f32 %v771_v5, %v745_v6  ;;  %v1128_v5 = vsub.f32 %v2224_v56, %v1127_v63  ;;  %v1133_v6 = vand.u32 4294901760, %v2232_v0  ;;  %1017 = vmatmul.f32.vlgmr.msrb.gmra.mxu3 %v916_v4 }
  0xf6   : > { %v795_v11 = vadd.f32 %v794_v7, %v772_v9  ;;  %v939_v7 = vand.u32 4294901760, %v938_v1  ;;  %v945_v9 = vand.u32 4294901760, %v944_v2 }
  0xf8   : > { %v801_v12 = vadd.f32 %v1678_v10, %v795_v11  ;;  %v917_v10 = vsub.f32 %v915_v61, %v916_v4  ;;  %v956_v11 = vsub.f32 %v954_v55, %v955_v62  ;;  %940 = vmatpush.msrb.mxu1 %v939_v7 }
  0xfa   : > { %1680 = vtanh.f32 %v801_v12  ;;  %v802_v15 = vsub.f32 0.0, %v801_v12  ;;  %v1129_v12 = vand.u32 4294901760, %v1128_v5  ;;  %946 = vmatpush.msrb.mxu1 %v945_v9  ;;  %v849_v9 = vsub.f32 1.0, %v2185_v19 }
  0xfc   : > { %v803_v16 = vmul.f32 1.442695, %v802_v15  ;;  %v951_v15 = vand.u32 4294901760, %v950_v3  ;;  %1130 = vmatpush.msra.mxu3 %v1129_v12  ;;  %v1679_v3 = vld [vmem:[%s2121_s25 + $0x1] ss:$0 sm:$0xff]  ;;  %s1890_s25 = smov 96  }
  0xfe   : > { %1682 = vpow2.f32 %v803_v16  ;;  %v918_v16 = vand.u32 4294901760, %v917_v10  ;;  %952 = vmatpush.msrb.mxu1 %v951_v15 }
 0x100   : > { %v1681_v13 = vpop.eup %1680  ;;  %919 = vmatmul.f32.vlgmr.msrb.gmra.mxu0 %v918_v16 }
 0x101   : > { %828 = vrot.lane.b32.xlu0 %v1681_v13, %s1887_s4  ;;  %v1134_v13 = vsub.f32 %v2232_v0, %v1133_v6  ;;  %1168 = vmatpush.msrb.mxu0 %v2224_v56 }
 0x103   : > { %1171 = vmatpush.msrb.mxu0 %v2232_v0 }
 0x104   : > { %v1683_v17 = vpop.eup %1682 }
 0x105   : > { %v805_v18 = vadd.f32 1.0, %v1683_v17  ;;  %v1135_v17 = vand.u32 4294901760, %v1134_v13 }
 0x107   : > { %1684 = vrcp.f32 %v805_v18  ;;  %v817_v26 = vand.u32 2147483648, %v805_v18  ;;  %vm811_vm4 = vweird.f32 %v805_v18  ;;  %v815_v27 = vand.u32 2147483647, %v805_v18  ;;  %1136 = vmatpush.msra.mxu3 %v1135_v17 }
 0x108   : > { %1050 = vmatmul.f32.vlgmr.msra.gmra.mxu0 %v914_v54 }
 0x109   : > { %823 = vrot.lane.b32.xlu0 %v2180_v14, %s1888_s30  ;;  %v818_v29 = vor.u32 1.1754944e-38, %v817_v26  ;;  %vm816_vm6 = vcmp.eq.f32.partialorder %v815_v27, 8.507059e+37  ;;  %v878_v26 = vld [vmem:[%s2116_s0] sm:$0xff] }
 0x10d   : > { %v1685_v20 = vpop.eup %1684 }
 0x10e   : > { %v807_v22 = vmul.f32 %v1685_v20, %v805_v18  ;;  %vm812_vm3 = vweird.f32 %v1685_v20  ;;  %v957_v18 = vand.u32 4294901760, %v956_v11 }
 0x10f   : > { %vm813_vm5 = vmor %vm811_vm4, %vm812_vm3 }
 0x110   : > { %v808_v23 = vsub.f32 1.0, %v807_v22  ;;  %958 = vmatpush.msrb.mxu1 %v957_v18  ;;  %v2255_v22 = vpop.permute.xlu2 %845 }
 0x111   : > { %960 = vmatmul.f32.vlgmr.msrb.gmra.mxu1 %v914_v54 }
 0x112   : > { %v809_v24 = vmul.f32 %v1685_v20, %v808_v23  ;;  %1067 = vmatpush.msra.mxu1 %v2200_v41 }
 0x114   : > { %v810_v25 = vadd.f32 %v1685_v20, %v809_v24  ;;  %1069 = vmatpush.msra.mxu1 %v2202_v42  ;;  %v879_v24 = vld [vmem:[%s2116_s0 + $0x8] sm:$0xff] }
 0x116   : > { %v814_v28 = vsel %vm813_vm5, %v1685_v20, %v810_v25  ;;  %1071 = vmatpush.msra.mxu1 %v2204_v43  ;;  %v1100_v25 = vand.u32 4294901760, %v879_v24 }
 0x117   : > { %v2188_v31 = vsel %vm816_vm6, %v818_v29, %v814_v28  ;;  %v1102_v28 = vand.u32 4294901760, %v878_v26 }
 0x118   : > { %1073 = vmatpush.msra.mxu1 %v2210_v47  ;;  %v1138_v27 = vsub.f32 %v879_v24, %v1100_v25  ;;  %1101 = vmatpush.msra.mxu2 %v1100_v25 }
 0x119   : > { %1075 = vmatmul.f32.vlgmr.msra.gmra.mxu1 %v914_v54 }
 0x11a   : > { %1197 = vmatpush.msrb.mxu1 %v2214_v49  ;;  %v1139_v29 = vand.u32 4294901760, %v1138_v27  ;;  %1174 = vmatpush.msrb.mxu0 %v1138_v27 }
 0x11b   : > { %1103 = vmatpush.msra.mxu2 %v1102_v28 }
 0x11c   : > { %1199 = vmatpush.msrb.mxu1 %v2226_v57 }
 0x11d   : > { %1226 = vmatpush.msrb.mxu2 %v1127_v63 }
 0x11e   : > { %1201 = vmatpush.msrb.mxu1 %v1100_v25 }
 0x11f   : > { %1230 = vmatpush.msrb.mxu2 %v1133_v6 }
 0x120   : > { %1203 = vmatpush.msrb.mxu1 %v1102_v28 }
 0x121   : > { %1234 = vmatpush.msrb.mxu2 %v1139_v29 }
 0x173   : > { %v829_v30 = vpop.permute.xlu0 %828 }
 0x174   : > { %v831_v32 = vmul.f32 %v829_v30, %v2188_v31  ;;  %v1144_v30 = vsub.f32 %v878_v26, %v1102_v28 }
 0x176   : > { %833 = vrot.lane.b32.xlu1 %v831_v32, %s1888_s30  ;;  %v1145_v32 = vand.u32 4294901760, %v1144_v30  ;;  %1177 = vmatpush.msrb.mxu0 %v1144_v30 }
 0x177   : > { %v1018_v51 = vpop.f32.mrf.mxu3 }
 0x178   : > { %1238 = vmatpush.msrb.mxu2 %v1145_v32 }
 0x17b   : > { %v824_v33 = vpop.permute.xlu0 %823 }
 0x17c   : > { %v826_v34 = vmul.f32 %v824_v33, %v2188_v31 }
 0x17d   : > { %v920_v46 = vpop.f32.mrf.mxu0 }
 0x185   : > { %v1051_v53 = vpop.f32.mrf.mxu0 }
 0x18e   : > { %v961_v47 = vpop.f32.mrf.mxu1 }
 0x18f   : > { %v962_v48 = vadd.f32 %v961_v47, %v920_v46 }
 0x196   : > { %v1076_v55 = vpop.f32.mrf.mxu1 }
 0x1e8   : > { %v834_v35 = vpop.permute.xlu1 %833 }
 0x1e9   : > { %v2193_v36 = vadd.f32 %v834_v35, %v826_v34  ;;  %v1146_v34 = vsub.f32 %v1144_v30, %v1145_v32 }
 0x1eb   : > { %1686 = vtanh.f32 %v2193_v36  ;;  %v1147_v35 = vand.u32 4294901760, %v1146_v34 }
 0x1f1   : > { %v1687_v37 = vpop.eup %1686 }
 0x1f2   : > { %839 = vrot.lane.b32.xlu1 %v1687_v37, %s1887_s4  ;;  %v2271_v37 = vld [vmem:[#allocation3 + $0x8] sm:$0xff] }
 0x1fa   : > { %1296 = vrot.lane.b32.xlu1 %v2271_v37, %s1888_s30 }
 0x264   : > { %v840_v20 = vpop.permute.xlu1 %839 }
 0x265   : > { %v842_v21 = vmul.f32 %v840_v20, %v2188_v31  ;;  %v1140_v31 = vsub.f32 %v1138_v27, %v1139_v29 }
 0x267   : > { %v2259_v23 = vmul.f32 %v2255_v22, %v842_v21  ;;  %v1141_v33 = vand.u32 4294901760, %v1140_v31 }
 0x269   : > { %1080 = vrot.lane.b32.xlu2 %v2259_v23, %s1888_s30  ;;  %1142 = vmatpush.msra.mxu3 %v1141_v33 }
 0x26b   : > { %1148 = vmatpush.msra.mxu3 %v1147_v35 }
 0x26c   : > { %v1297_v33 = vpop.permute.xlu1 %1296 }
 0x26d   : > { %1257 = vmatpush.msrb.mxu3 %v2214_v49  ;;  %v991_v49 = vpop.f32.mrf.mxu2 }
 0x26e   : > { %v992_v50 = vadd.f32 %v991_v49, %v962_v48  ;;  %v866_v48 = vmul.f32 %v2255_v22, %v2193_v36 }
 0x26f   : > { %1259 = vmatpush.msrb.mxu3 %v2226_v57 }
 0x270   : > { %v1019_v52 = vadd.f32 %v1018_v51, %v992_v50 }
 0x271   : > { %1261 = vmatpush.msrb.mxu3 %v1100_v25 }
 0x272   : > { %v1052_v54 = vadd.f32 %v1051_v53, %v1019_v52 }
 0x273   : > { %1263 = vmatpush.msrb.mxu3 %v1102_v28 }
 0x274   : > { %v1077_v56 = vadd.f32 %v1076_v55, %v1052_v54 }
 0x2c3   : > { %v1081_v38 = vpop.permute.xlu2 %1080 }
 0x2c4   : > { %v1082_v39 = vsel %vm445_vm1, %v1081_v38, 0 }
 0x2c5   : > { %v1104_v40 = vand.u32 4294901760, %v1082_v39 }
 0x2c7   : > { %v1105_v41 = vsub.f32 %v1082_v39, %v1104_v40  ;;  %1150 = vmatmul.f32.vlgmr.msra.gmra.mxu3 %v1104_v40 }
 0x2c9   : > { %v1106_v42 = vand.u32 4294901760, %v1105_v41  ;;  %1180 = vmatmul.f32.vlgmr.msrb.gmra.mxu0 %v1105_v41 }
 0x2cb   : > { %v1107_v43 = vsub.f32 %v1105_v41, %v1106_v42  ;;  %1207 = vmatmul.f32.vlgmr.msrb.gmra.mxu1 %v1106_v42 }
 0x2cd   : > { %v1108_v44 = vand.u32 4294901760, %v1107_v43 }
 0x2cf   : > { %1109 = vmatmul.f32.vlgmr.msra.gmra.mxu2 %v1108_v44  ;;  %1265 = vmatmul.f32.vlgmr.msrb.gmra.mxu3 %v1104_v40 }
 0x2d7   : > { %1240 = vmatmul.f32.vlgmr.msrb.gmra.mxu2 %v1104_v40 }
 0x346   : > { %v1181_v61 = vpop.f32.mrf.mxu0 }
 0x348   : > { %v1208_v63 = vpop.f32.mrf.mxu1 }
 0x34a   : > { %v1151_v57 = vpop.f32.mrf.mxu3 }
 0x352   : > { %v1110_v58 = vpop.f32.mrf.mxu2  ;;  %v1266_v4 = vpop.f32.mrf.mxu3 }
 0x353   : > { %v1111_v59 = vadd.f32 %v1110_v58, %v1077_v56 }
 0x355   : > { %v1152_v60 = vadd.f32 %v1151_v57, %v1111_v59 }
 0x357   : > { %v1182_v62 = vadd.f32 %v1181_v61, %v1152_v60 }
 0x359   : > { %v1209_v0 = vadd.f32 %v1208_v63, %v1182_v62 }
 0x35a   : > { %v1241_v1 = vpop.f32.mrf.mxu2 }
 0x35b   : > { %v1242_v2 = vadd.f32 %v1241_v1, %v1209_v0 }
 0x35d   : > { %v1267_v5 = vadd.f32 %v1266_v4, %v1242_v2 }
 0x35f   : > { %v1274_v6 = vadd.f32 %v1679_v3, %v1267_v5 }
 0x361   : > { %1688 = vtanh.f32 %v1274_v6  ;;  %v1275_v10 = vsub.f32 0.0, %v1274_v6 }
 0x363   : > { %v1276_v11 = vmul.f32 1.442695, %v1275_v10 }
 0x365   : > { %1690 = vpow2.f32 %v1276_v11 }
 0x367   : > { %v1689_v7 = vpop.eup %1688 }
 0x368   : > { %1301 = vrot.lane.b32.xlu0 %v1689_v7, %s1887_s4 }
 0x36b   : > { %v1691_v12 = vpop.eup %1690 }
 0x36c   : > { %v1278_v13 = vadd.f32 1.0, %v1691_v12 }
 0x36e   : > { %1692 = vrcp.f32 %v1278_v13  ;;  %v1290_v21 = vand.u32 2147483648, %v1278_v13  ;;  %vm1284_vm8 = vweird.f32 %v1278_v13  ;;  %v1288_v24 = vand.u32 2147483647, %v1278_v13 }
 0x370   : > { %852 = vperm.xlu0 %1677, %v849_v9   ;;  %v1291_v26 = vor.u32 1.1754944e-38, %v1290_v21  ;;  %vm1289_vm10 = vcmp.eq.f32.partialorder %v1288_v24, 8.507059e+37 }
 0x374   : > { %v1693_v15 = vpop.eup %1692 }
 0x375   : > { %v1280_v16 = vmul.f32 %v1693_v15, %v1278_v13  ;;  %vm1285_vm7 = vweird.f32 %v1693_v15 }
 0x376   : > { %vm1286_vm9 = vmor %vm1284_vm8, %vm1285_vm7 }
 0x377   : > { %v1281_v17 = vsub.f32 1.0, %v1280_v16 }
 0x379   : > { %v1282_v18 = vmul.f32 %v1693_v15, %v1281_v17 }
 0x37b   : > { %v1283_v20 = vadd.f32 %v1693_v15, %v1282_v18 }
 0x37d   : > { %v1287_v25 = vsel %vm1286_vm9, %v1693_v15, %v1283_v20 }
 0x37e   : > { %v1292_v19 = vsel %vm1289_vm10, %v1291_v26, %v1287_v25 }
 0x37f   : > { %v1299_v34 = vmul.f32 %v1297_v33, %v1292_v19 }
 0x3da   : > { %v1302_v27 = vpop.permute.xlu0 %1301 }
 0x3db   : > { %v1304_v28 = vmul.f32 %v1302_v27, %v1292_v19 }
 0x3dd   : > { %1306 = vrot.lane.b32.xlu2 %v1304_v28, %s1888_s30 }
 0x3e2   : > { %v853_v29 = vpop.permute.xlu0 %852 }
 0x3e3   : > { %v1329_v30 = vmul.f32 %v2271_v37, %v853_v29  ;;  %v855_v31 = vmul.f32 %v853_v29, %v2136_v8  ;;  %v1317_v32 = vmul.f32 %v2207_v45, %v853_v29  ;;  %v867_v8 = vmul.f32 %v853_v29, %v2180_v14 }
 0x3e5   : > { %1331 = vrot.lane.b32.xlu0 %v1329_v30, %s1888_s30  ;;  %857 = vrot.lane.b32.xlu2 %v855_v31, %s1890_s25 }
 0x3ed   : > { %1319 = vrot.lane.b32.xlu2 %v1317_v32, %s1890_s25 }
 0x437   : > { %v1307_v35 = vpop.permute.xlu2 %1306 }
 0x438   : > { %v1309_v38 = vadd.f32 %v1307_v35, %v1299_v34 }
 0x43a   : > { %1694 = vtanh.f32 %v1309_v38  ;;  %v1328_v45 = vmul.f32 %v1309_v38, %v2255_v22 }
 0x43f   : > { %v858_v39 = vpop.permute.xlu2 %857 }
 0x440   : > { %v1695_v40 = vpop.eup %1694  ;;  %v860_v37 = vadd.f32 %v858_v39, %v2259_v23 }
 0x441   : > { %1312 = vrot.lane.b32.xlu1 %v1695_v40, %s1887_s4 }
 0x442   : > { %862 = vrot.lane.b32.xlu2 %v860_v37, %s1888_s30 }
 0x447   : > { %v1320_v43 = vpop.permute.xlu2 %1319 }
 0x449   : > { %869 = vrot.lane.b32.xlu1 %v867_v8, %s1888_s30 }
 0x457   : > { %v1332_v41 = vpop.permute.xlu0 %1331 }
 0x458   : > { %v1334_v42 = vadd.f32 %v1332_v41, %v1328_v45 }
 0x45a   : > { %1336 = vrot.lane.b32.xlu2 %v1334_v42, %s1890_s25 }
 0x49c   : > { %v863_v44 = vpop.permute.xlu2 %862 }
 0x49d   : > { %865 = vst.msk [vmem:[#allocation2] sm:$0xff] %vm445_vm1, %v863_v44 }
 0x4b3   : > { %v1313_v23 = vpop.permute.xlu1 %1312 }
 0x4b4   : > { %v1315_v46 = vmul.f32 %v1313_v23, %v1292_v19  ;;  %v1337_v47 = vpop.permute.xlu2 %1336 }
 0x4b5   : > { %1339 = vst.msk [vmem:[#allocation3 + $0x8] sm:$0xff] %vm445_vm1, %v1337_v47 }
 0x4b6   : > { %v1316_v14 = vmul.f32 %v1315_v46, %v2255_v22 }
 0x4b8   : > { %1341 = vrot.lane.b32.xlu1 %v1316_v14, %s1888_s30  ;;  %v1322_v51 = vadd.f32 %v1320_v43, %v1316_v14 }
 0x4bb   : > { %v870_v49 = vpop.permute.xlu1 %869 }
 0x4bc   : > { %v872_v50 = vadd.f32 %v870_v49, %v866_v48 }
 0x4be   : > { %874 = vrot.lane.b32.xlu0 %v872_v50, %s1890_s25 }
 0x4c0   : > { %1324 = vrot.lane.b32.xlu1 %v1322_v51, %s1888_s30 }
 0x52a   : > { %v1342_v36 = vpop.permute.xlu1 %1341 }
 0x52b   : > { %1344 = vst.msk [vmem:[%s2123_s18] sm:$0xff] %vm445_vm1, %v1342_v36 }
 0x52c   : > { %1783 = shalt.err (!%p1780_p9)
}
 0x52d   : > { %1566 = dma.vmem_to_hbm [thread:$0]  (%p2048_p5), %s1362_s11, 128, %s1364_s20, %s1346_s19  }
 0x530   : > { %v875_v22 = vpop.permute.xlu0 %874 }
 0x531   : > { %877 = vst.msk [vmem:[#allocation3] sm:$0xff] %vm445_vm1, %v875_v22 }
 0x532   : > { %v1325_v52 = vpop.permute.xlu1 %1324 }
 0x533   : > { %1327 = vst.msk [vmem:[#allocation2 + $0x8] sm:$0xff] %vm445_vm1, %v1325_v52 }
 0x534 PF: > { %s2403_s26 = sld [smem:[#allocation13_spill]]  ;;  %p1580_p11 = scmp.ge.s32.totalorder %s1882_s7, 2 }
 0x536   : > { %p1576_p3 = pnand %p1580_p11, %p2056_p10 }
 0x538   : > { %p1577_p12 = pneg %p1576_p3 }
 0x53a   : > { %s1375_s17 = sand.u32 1, %s2403_s26  }
 0x53b   : > { %s1376_s18 = scalar_lea.sflag [#allocation6], %s1375_s17 }
 0x53c   : > { %1837 = dma.done.wait (%p1577_p12), %s1376_s18, 128  }
 0x53d   : > { %1839 = vsyncadd (%p1577_p12), %s1376_s18, 4294967168  ;;  %s25_s7 = sadd.s32 1, %s1882_s7   ;;  %s2405_s4 = sld [smem:[#allocation20_spill]] }
 0x53e   : > { %p22_p5 = scmp.ge.s32.totalorder %s25_s7, 26   ;;  %s2406_s24 = sld [smem:[#allocation14_spill]] }
 0x53f   : > { %s2407_s25 = sld [smem:[#allocation15_spill]]  ;;  %s2413_s21 = smov %s1846_s22 }
 0x540   : > { %s2408_s26 = sld [smem:[#allocation21_spill]]  ;;  %s2414_s22 = smov %s1850_s23 }
 0x541   : > { %s2409_s27 = sld [smem:[#allocation16_spill]]  ;;  %24 = sbr.rel (!%p22_p5) target bundleno = 16 (0x10), region = 122 }
 0x542   : > { %s2410_s28 = sld [smem:[#allocation17_spill]] }
 0x543   : > { %s2411_s29 = sld [smem:[#allocation18_spill]]  ;;  %s2415_s23 = smov %s2405_s4 }
 0x544   : > { %s2412_s30 = sld [smem:[#allocation19_spill]] }
 0x546   :  { %1382 = vsyncpa [#allocation5], 1 }
 0x547   :  { %1384 = vsyncpa [#allocation5 + $0x1], 1 }
 0x548   :  { %1385 = vsyncpa [#allocation8], 1 }
 0x549   :  { %1387 = vsyncpa [#allocation8 + $0x1], 1 }
 0x54a   :  { %1388 = vsyncpa [#allocation6], 1 }
 0x54b   :  { %1390 = vsyncpa [#allocation6 + $0x1], 1 }

</bundles_post_ra>
